<compile_context>
chip_gen: v7x
topology: tpu7x:2x2x1
jax: 0.10.0
libtpu: 0.0.40
codegen_flags: <defaults>
</compile_context>

<pallas_src>
import functools
import math

import jax
import jax.numpy as jnp
from jax import lax
from jax.experimental import pallas as pl
from jax.experimental.pallas import tpu as pltpu


# ---------------------------------------------------------------------------
# Fused kernel: projections + multi-head attention + output projection,
# one batch element per grid step.
# ---------------------------------------------------------------------------
def _mha_fused_kernel(q_ref, k_ref, v_ref, m_ref,
                      wq_ref, bq_ref, wk_ref, bk_ref, wv_ref, bv_ref,
                      wo_ref, bo_ref, o_ref, *, n_head, d_k, scale, min_value):
    xq = q_ref[0]                       # (T1, F)
    xk = k_ref[0]                       # (T2, F)
    xv = v_ref[0]                       # (T2, F)
    masked = m_ref[0] == 0              # (Tm, T2) bool, True => masked out

    cdt = xq.dtype                      # dtype fed to the MXU (bf16 stays bf16)

    # Wide, lane-dense Q/K/V projections (N = n_attn, not d_k).
    q_all = (jnp.dot(xq, wq_ref[...], preferred_element_type=jnp.float32)
             + bq_ref[...]).astype(cdt)             # (T1, A)
    k_all = (jnp.dot(xk, wk_ref[...], preferred_element_type=jnp.float32)
             + bk_ref[...]).astype(cdt)             # (T2, A)
    v_all = (jnp.dot(xv, wv_ref[...], preferred_element_type=jnp.float32)
             + bv_ref[...]).astype(cdt)             # (T2, A)

    t1 = xq.shape[0]
    n_feat = wo_ref.shape[1]
    acc = jnp.zeros((t1, n_feat), jnp.float32)      # output-proj accumulator

    # Contract last dims of q and k directly (no materialized k.T).
    dn = (((1,), (1,)), ((), ()))

    for h in range(n_head):             # static loop; heads stay lane-packed
        lo = h * d_k
        qh = q_all[:, lo:lo + d_k]      # (T1, dk)  static lane slice
        kh = k_all[:, lo:lo + d_k]      # (T2, dk)
        vh = v_all[:, lo:lo + d_k]      # (T2, dk)

        s = lax.dot_general(qh, kh, dn,
                            preferred_element_type=jnp.float32) * scale
        s = jnp.where(masked, min_value, s)                       # (T1, T2)
        e = jnp.exp(s - jnp.max(s, axis=-1, keepdims=True))
        denom = jnp.sum(e, axis=-1, keepdims=True)
        inv = pl.reciprocal(denom, approx=True)                   # EUP slot
        attn = e * jnp.where(masked, 0.0, inv)   # normalize + post-softmax mask

        ctx_h = jnp.dot(attn.astype(cdt), vh,
                        preferred_element_type=jnp.float32)       # (T1, dk)
        # Fold the head merge into the output projection: sublane-aligned
        # static slice of Wo, accumulate into the lane-dense (T1, n_feat) slab.
        acc = acc + jnp.dot(ctx_h.astype(cdt), wo_ref[lo:lo + d_k, :],
                            preferred_element_type=jnp.float32)

    o_ref[0] = (acc + bo_ref[...]).astype(o_ref.dtype)


def multi_headed_attention(params, query, key, value, mask, n_head, d_k):
    """query: (B,T1,F), key/value: (B,T2,F), mask: (B,1,T2) or (B,T1,T2)."""
    B, T1, F = query.shape
    T2 = key.shape[1]
    A = params["wq"].shape[0]           # n_attn
    n_feat = params["wo"].shape[0]

    if mask is None:
        mask = jnp.ones((B, 1, T2), jnp.int32)
    mask = mask.astype(jnp.int32)
    Tm = mask.shape[1]                  # 1 or T1 (broadcast inside the kernel)

    wq_t = params["wq"].T               # (F, A)
    wk_t = params["wk"].T
    wv_t = params["wv"].T
    wo_t = params["wo"].T               # (A, n_feat)
    bq = params["bq"].reshape(1, A)
    bk = params["bk"].reshape(1, A)
    bv = params["bv"].reshape(1, A)
    bo = params["bo"].reshape(1, n_feat)

    kern = functools.partial(
        _mha_fused_kernel,
        n_head=n_head, d_k=d_k,
        scale=1.0 / math.sqrt(d_k),
        min_value=float(jnp.finfo(jnp.float32).min),
    )

    return pl.pallas_call(
        kern,
        out_shape=jax.ShapeDtypeStruct((B, T1, n_feat), query.dtype),
        grid=(B,),
        in_specs=[
            pl.BlockSpec((1, T1, F), lambda b: (b, 0, 0)),     # query
            pl.BlockSpec((1, T2, F), lambda b: (b, 0, 0)),     # key
            pl.BlockSpec((1, T2, F), lambda b: (b, 0, 0)),     # value
            pl.BlockSpec((1, Tm, T2), lambda b: (b, 0, 0)),    # mask (no pre-bcast)
            pl.BlockSpec((F, A), lambda b: (0, 0)),            # Wq^T (VMEM-resident)
            pl.BlockSpec((1, A), lambda b: (0, 0)),
            pl.BlockSpec((F, A), lambda b: (0, 0)),            # Wk^T
            pl.BlockSpec((1, A), lambda b: (0, 0)),
            pl.BlockSpec((F, A), lambda b: (0, 0)),            # Wv^T
            pl.BlockSpec((1, A), lambda b: (0, 0)),
            pl.BlockSpec((A, n_feat), lambda b: (0, 0)),       # Wo^T
            pl.BlockSpec((1, n_feat), lambda b: (0, 0)),
        ],
        out_specs=pl.BlockSpec((1, T1, n_feat), lambda b: (b, 0, 0)),
        compiler_params=pltpu.CompilerParams(
            dimension_semantics=("parallel",)),
    )(query, key, value, mask, wq_t, bq, wk_t, bk, wv_t, bv, wo_t, bo)


# ---------------------------------------------------------------------------
# Pure-JAX reference (for a correctness check)
# ---------------------------------------------------------------------------
def reference(params, query, key, value, mask, n_head, d_k):
    B, T1, _ = query.shape
    T2 = key.shape[1]
    q = query @ params["wq"].T + params["bq"]
    k = key @ params["wk"].T + params["bk"]
    v = value @ params["wv"].T + params["bv"]
    q = q.reshape(B, T1, n_head, d_k).transpose(0, 2, 1, 3)
    k = k.reshape(B, T2, n_head, d_k).transpose(0, 2, 1, 3)
    v = v.reshape(B, T2, n_head, d_k).transpose(0, 2, 1, 3)
    scores = jnp.einsum("bhqd,bhkd->bhqk", q, k) / math.sqrt(d_k)
    m = (mask == 0)[:, None, :, :]     # broadcast over heads (and time1 if 1)
    scores = jnp.where(m, jnp.finfo(scores.dtype).min, scores)
    attn = jax.nn.softmax(scores, axis=-1)
    attn = jnp.where(m, 0.0, attn)
    x = jnp.einsum("bhqk,bhkd->bhqd", attn, v)
    x = x.transpose(0, 2, 1, 3).reshape(B, T1, n_head * d_k)
    return x @ params["wo"].T + params["bo"]


# ---------------------------------------------------------------------------
def init_params(key, n_feat, n_attn):
    """Deterministic init mimicking nn.Linear (uniform +-1/sqrt(fan_in))."""
    ks = jax.random.split(key, 8)
    def lin(kw, kb, fan_in, fan_out):
        bound = 1.0 / math.sqrt(fan_in)
        w = jax.random.uniform(kw, (fan_out, fan_in), jnp.float32, -bound, bound)
        b = jax.random.uniform(kb, (fan_out,), jnp.float32, -bound, bound)
        return w, b
    wq, bq = lin(ks[0], ks[1], n_feat, n_attn)
    wk, bk = lin(ks[2], ks[3], n_feat, n_attn)
    wv, bv = lin(ks[4], ks[5], n_feat, n_attn)
    wo, bo = lin(ks[6], ks[7], n_attn, n_feat)
    return dict(wq=wq, bq=bq, wk=wk, bk=bk, wv=wv, bv=bv, wo=wo, bo=bo)


if __name__ == "__main__":
    # Small shapes: n_head=4, n_feat=32, n_attn=32 -> d_k=8; batch=2, seq=8.
    n_head, n_feat, n_attn = 4, 32, 32
    d_k = n_attn // n_head
    B, T1, T2 = 2, 8, 8

    root = jax.random.PRNGKey(0)
    kp, kq, kk, kv = jax.random.split(root, 4)
    params = init_params(kp, n_feat, n_attn)

    query = jax.random.normal(kq, (B, T1, n_feat), jnp.float32)
    key = jax.random.normal(kk, (B, T2, n_feat), jnp.float32)
    value = jax.random.normal(kv, (B, T2, n_feat), jnp.float32)
    # Padding mask (B, 1, T2): last two key positions of batch 1 are padded.
    lengths = jnp.array([T2, T2 - 2])
    mask = (jnp.arange(T2)[None, :] < lengths[:, None]).astype(jnp.int32)[:, None, :]

    out = multi_headed_attention(params, query, key, value, mask, n_head, d_k)
    out = jax.block_until_ready(out)

    ref = reference(params, query, key, value, mask, n_head, d_k)
    assert out.shape == (B, T1, n_feat)
    # Tolerance relaxed slightly because the softmax denominator uses the
    # approximate EUP reciprocal (pl.reciprocal(..., approx=True)).
    assert jnp.allclose(out, ref, atol=2e-3, rtol=2e-3), "mismatch vs reference"

    print("KERNEL_OK")
</pallas_src>

<mosaic_0001>
module attributes {stable_mosaic.version = 11 : i64} {
  func.func @_mha_fused_kernel(%arg0: i32, %arg1: memref<1x8x32xf32, #tpu.memory_space<vmem>>, %arg2: memref<1x8x32xf32, #tpu.memory_space<vmem>>, %arg3: memref<1x8x32xf32, #tpu.memory_space<vmem>>, %arg4: memref<1x1x8xi32, #tpu.memory_space<vmem>>, %arg5: memref<32x32xf32, #tpu.memory_space<vmem>>, %arg6: memref<1x32xf32, #tpu.memory_space<vmem>>, %arg7: memref<32x32xf32, #tpu.memory_space<vmem>>, %arg8: memref<1x32xf32, #tpu.memory_space<vmem>>, %arg9: memref<32x32xf32, #tpu.memory_space<vmem>>, %arg10: memref<1x32xf32, #tpu.memory_space<vmem>>, %arg11: memref<32x32xf32, #tpu.memory_space<vmem>>, %arg12: memref<1x32xf32, #tpu.memory_space<vmem>>, %arg13: memref<1x8x32xf32, #tpu.memory_space<vmem>>) attributes {dimension_semantics = [#tpu.dimension_semantics<parallel>], iteration_bounds = array<i64: 2>, scalar_prefetch = 0 : i64, scratch_operands = 0 : i64, tpu.core_type = #tpu.core_type<tc>, window_params = [{transform_indices = @transform_0, window_bounds = array<i64: 1, 8, 32>}, {transform_indices = @transform_1, window_bounds = array<i64: 1, 8, 32>}, {transform_indices = @transform_2, window_bounds = array<i64: 1, 8, 32>}, {transform_indices = @transform_3, window_bounds = array<i64: 1, 1, 8>}, {pipeline_mode = #tpu.pipeline_mode<synchronous>, transform_indices = @transform_4, window_bounds = array<i64: 32, 32>}, {pipeline_mode = #tpu.pipeline_mode<synchronous>, transform_indices = @transform_5, window_bounds = array<i64: 1, 32>}, {pipeline_mode = #tpu.pipeline_mode<synchronous>, transform_indices = @transform_6, window_bounds = array<i64: 32, 32>}, {pipeline_mode = #tpu.pipeline_mode<synchronous>, transform_indices = @transform_7, window_bounds = array<i64: 1, 32>}, {pipeline_mode = #tpu.pipeline_mode<synchronous>, transform_indices = @transform_8, window_bounds = array<i64: 32, 32>}, {pipeline_mode = #tpu.pipeline_mode<synchronous>, transform_indices = @transform_9, window_bounds = array<i64: 1, 32>}, {pipeline_mode = #tpu.pipeline_mode<synchronous>, transform_indices = @transform_10, window_bounds = array<i64: 32, 32>}, {pipeline_mode = #tpu.pipeline_mode<synchronous>, transform_indices = @transform_11, window_bounds = array<i64: 1, 32>}, {transform_indices = @transform_12, window_bounds = array<i64: 1, 8, 32>}]} {
    %c0 = arith.constant 0 : index
    %c0_0 = arith.constant 0 : index
    %c0_1 = arith.constant 0 : index
    %0 = vector.load %arg1[%c0, %c0_0, %c0_1] : memref<1x8x32xf32, #tpu.memory_space<vmem>>, vector<1x8x32xf32>
    %1 = vector.shape_cast %0 : vector<1x8x32xf32> to vector<8x32xf32>
    %c0_2 = arith.constant 0 : index
    %c0_3 = arith.constant 0 : index
    %c0_4 = arith.constant 0 : index
    %2 = vector.load %arg2[%c0_2, %c0_3, %c0_4] : memref<1x8x32xf32, #tpu.memory_space<vmem>>, vector<1x8x32xf32>
    %3 = vector.shape_cast %2 : vector<1x8x32xf32> to vector<8x32xf32>
    %c0_5 = arith.constant 0 : index
    %c0_6 = arith.constant 0 : index
    %c0_7 = arith.constant 0 : index
    %4 = vector.load %arg3[%c0_5, %c0_6, %c0_7] : memref<1x8x32xf32, #tpu.memory_space<vmem>>, vector<1x8x32xf32>
    %5 = vector.shape_cast %4 : vector<1x8x32xf32> to vector<8x32xf32>
    %c0_8 = arith.constant 0 : index
    %c0_9 = arith.constant 0 : index
    %c0_10 = arith.constant 0 : index
    %6 = vector.load %arg4[%c0_8, %c0_9, %c0_10] : memref<1x1x8xi32, #tpu.memory_space<vmem>>, vector<1x1x8xi32>
    %7 = vector.shape_cast %6 : vector<1x1x8xi32> to vector<1x8xi32>
    %c0_i32 = arith.constant 0 : i32
    %8 = vector.broadcast %c0_i32 : i32 to vector<1x8xi32>
    %9 = arith.cmpi eq, %7, %8 : vector<1x8xi32>
    %c0_11 = arith.constant 0 : index
    %c0_12 = arith.constant 0 : index
    %10 = vector.load %arg5[%c0_11, %c0_12] : memref<32x32xf32, #tpu.memory_space<vmem>>, vector<32x32xf32>
    %cst = arith.constant dense<0.000000e+00> : vector<8x32xf32>
    %11 = tpu.matmul %1, %10, %cst {dimension_numbers = #tpu.dot_dimension_numbers<[1], [0], [0], [1], [0, 0, 1, 1], [], []>} : vector<8x32xf32>, vector<32x32xf32>, vector<8x32xf32> -> vector<8x32xf32>
    %c0_13 = arith.constant 0 : index
    %c0_14 = arith.constant 0 : index
    %12 = vector.load %arg6[%c0_13, %c0_14] : memref<1x32xf32, #tpu.memory_space<vmem>>, vector<1x32xf32>
    %13 = vector.broadcast %12 : vector<1x32xf32> to vector<8x32xf32>
    %14 = arith.addf %11, %13 : vector<8x32xf32>
    %c0_15 = arith.constant 0 : index
    %c0_16 = arith.constant 0 : index
    %15 = vector.load %arg7[%c0_15, %c0_16] : memref<32x32xf32, #tpu.memory_space<vmem>>, vector<32x32xf32>
    %cst_17 = arith.constant dense<0.000000e+00> : vector<8x32xf32>
    %16 = tpu.matmul %3, %15, %cst_17 {dimension_numbers = #tpu.dot_dimension_numbers<[1], [0], [0], [1], [0, 0, 1, 1], [], []>} : vector<8x32xf32>, vector<32x32xf32>, vector<8x32xf32> -> vector<8x32xf32>
    %c0_18 = arith.constant 0 : index
    %c0_19 = arith.constant 0 : index
    %17 = vector.load %arg8[%c0_18, %c0_19] : memref<1x32xf32, #tpu.memory_space<vmem>>, vector<1x32xf32>
    %18 = vector.broadcast %17 : vector<1x32xf32> to vector<8x32xf32>
    %19 = arith.addf %16, %18 : vector<8x32xf32>
    %c0_20 = arith.constant 0 : index
    %c0_21 = arith.constant 0 : index
    %20 = vector.load %arg9[%c0_20, %c0_21] : memref<32x32xf32, #tpu.memory_space<vmem>>, vector<32x32xf32>
    %cst_22 = arith.constant dense<0.000000e+00> : vector<8x32xf32>
    %21 = tpu.matmul %5, %20, %cst_22 {dimension_numbers = #tpu.dot_dimension_numbers<[1], [0], [0], [1], [0, 0, 1, 1], [], []>} : vector<8x32xf32>, vector<32x32xf32>, vector<8x32xf32> -> vector<8x32xf32>
    %c0_23 = arith.constant 0 : index
    %c0_24 = arith.constant 0 : index
    %22 = vector.load %arg10[%c0_23, %c0_24] : memref<1x32xf32, #tpu.memory_space<vmem>>, vector<1x32xf32>
    %23 = vector.broadcast %22 : vector<1x32xf32> to vector<8x32xf32>
    %24 = arith.addf %21, %23 : vector<8x32xf32>
    %cst_25 = arith.constant 0.000000e+00 : f32
    %25 = vector.broadcast %cst_25 : f32 to vector<8x32xf32>
    %26 = vector.extract_strided_slice %14 {offsets = [0, 0], sizes = [8, 8], strides = [1, 1]} : vector<8x32xf32> to vector<8x8xf32>
    %27 = vector.extract_strided_slice %19 {offsets = [0, 0], sizes = [8, 8], strides = [1, 1]} : vector<8x32xf32> to vector<8x8xf32>
    %28 = vector.extract_strided_slice %24 {offsets = [0, 0], sizes = [8, 8], strides = [1, 1]} : vector<8x32xf32> to vector<8x8xf32>
    %cst_26 = arith.constant dense<0.000000e+00> : vector<8x8xf32>
    %29 = tpu.matmul %26, %27, %cst_26 {dimension_numbers = #tpu.dot_dimension_numbers<[1], [1], [0], [0], [0, 0, 1, 0], [], []>} : vector<8x8xf32>, vector<8x8xf32>, vector<8x8xf32> -> vector<8x8xf32>
    %cst_27 = arith.constant 0.353553385 : f32
    %30 = vector.broadcast %cst_27 : f32 to vector<8x8xf32>
    %31 = arith.mulf %29, %30 : vector<8x8xf32>
    %cst_28 = arith.constant -3.40282347E+38 : f32
    %32 = vector.shape_cast %9 : vector<1x8xi1> to vector<1x8xi1>
    %33 = vector.broadcast %32 : vector<1x8xi1> to vector<8x8xi1>
    %34 = vector.broadcast %cst_28 : f32 to vector<8x8xf32>
    %35 = arith.select %33, %34, %31 : vector<8x8xi1>, vector<8x8xf32>
    %cst_29 = arith.constant dense<0xFF800000> : vector<8xf32>
    %36 = vector.multi_reduction <maximumf>, %35, %cst_29 [1] : vector<8x8xf32> to vector<8xf32>
    %37 = vector.shape_cast %36 : vector<8xf32> to vector<8x1xf32>
    %38 = vector.broadcast %37 : vector<8x1xf32> to vector<8x8xf32>
    %39 = arith.subf %35, %38 : vector<8x8xf32>
    %40 = math.exp %39 : vector<8x8xf32>
    %cst_30 = arith.constant dense<0.000000e+00> : vector<8xf32>
    %41 = vector.multi_reduction <add>, %40, %cst_30 [1] : vector<8x8xf32> to vector<8xf32>
    %42 = vector.shape_cast %41 : vector<8xf32> to vector<8x1xf32>
    %43 = tpu.reciprocal %42 {approx = true} : vector<8x1xf32> -> vector<8x1xf32>
    %cst_31 = arith.constant 0.000000e+00 : f32
    %44 = vector.shape_cast %9 : vector<1x8xi1> to vector<1x8xi1>
    %45 = vector.broadcast %44 : vector<1x8xi1> to vector<8x8xi1>
    %46 = vector.broadcast %cst_31 : f32 to vector<8x8xf32>
    %47 = vector.shape_cast %43 : vector<8x1xf32> to vector<8x1xf32>
    %48 = vector.broadcast %47 : vector<8x1xf32> to vector<8x8xf32>
    %49 = arith.select %45, %46, %48 : vector<8x8xi1>, vector<8x8xf32>
    %50 = arith.mulf %40, %49 : vector<8x8xf32>
    %cst_32 = arith.constant dense<0.000000e+00> : vector<8x8xf32>
    %51 = tpu.matmul %50, %28, %cst_32 {dimension_numbers = #tpu.dot_dimension_numbers<[1], [0], [0], [1], [0, 0, 1, 1], [], []>} : vector<8x8xf32>, vector<8x8xf32>, vector<8x8xf32> -> vector<8x8xf32>
    %c0_33 = arith.constant 0 : index
    %c0_34 = arith.constant 0 : index
    %52 = vector.load %arg11[%c0_33, %c0_34] : memref<32x32xf32, #tpu.memory_space<vmem>>, vector<8x32xf32>
    %cst_35 = arith.constant dense<0.000000e+00> : vector<8x32xf32>
    %53 = tpu.matmul %51, %52, %cst_35 {dimension_numbers = #tpu.dot_dimension_numbers<[1], [0], [0], [1], [0, 0, 1, 1], [], []>} : vector<8x8xf32>, vector<8x32xf32>, vector<8x32xf32> -> vector<8x32xf32>
    %54 = arith.addf %25, %53 : vector<8x32xf32>
    %55 = vector.extract_strided_slice %14 {offsets = [0, 8], sizes = [8, 8], strides = [1, 1]} : vector<8x32xf32> to vector<8x8xf32>
    %56 = vector.extract_strided_slice %19 {offsets = [0, 8], sizes = [8, 8], strides = [1, 1]} : vector<8x32xf32> to vector<8x8xf32>
    %57 = vector.extract_strided_slice %24 {offsets = [0, 8], sizes = [8, 8], strides = [1, 1]} : vector<8x32xf32> to vector<8x8xf32>
    %cst_36 = arith.constant dense<0.000000e+00> : vector<8x8xf32>
    %58 = tpu.matmul %55, %56, %cst_36 {dimension_numbers = #tpu.dot_dimension_numbers<[1], [1], [0], [0], [0, 0, 1, 0], [], []>} : vector<8x8xf32>, vector<8x8xf32>, vector<8x8xf32> -> vector<8x8xf32>
    %cst_37 = arith.constant 0.353553385 : f32
    %59 = vector.broadcast %cst_37 : f32 to vector<8x8xf32>
    %60 = arith.mulf %58, %59 : vector<8x8xf32>
    %cst_38 = arith.constant -3.40282347E+38 : f32
    %61 = vector.shape_cast %9 : vector<1x8xi1> to vector<1x8xi1>
    %62 = vector.broadcast %61 : vector<1x8xi1> to vector<8x8xi1>
    %63 = vector.broadcast %cst_38 : f32 to vector<8x8xf32>
    %64 = arith.select %62, %63, %60 : vector<8x8xi1>, vector<8x8xf32>
    %cst_39 = arith.constant dense<0xFF800000> : vector<8xf32>
    %65 = vector.multi_reduction <maximumf>, %64, %cst_39 [1] : vector<8x8xf32> to vector<8xf32>
    %66 = vector.shape_cast %65 : vector<8xf32> to vector<8x1xf32>
    %67 = vector.broadcast %66 : vector<8x1xf32> to vector<8x8xf32>
    %68 = arith.subf %64, %67 : vector<8x8xf32>
    %69 = math.exp %68 : vector<8x8xf32>
    %cst_40 = arith.constant dense<0.000000e+00> : vector<8xf32>
    %70 = vector.multi_reduction <add>, %69, %cst_40 [1] : vector<8x8xf32> to vector<8xf32>
    %71 = vector.shape_cast %70 : vector<8xf32> to vector<8x1xf32>
    %72 = tpu.reciprocal %71 {approx = true} : vector<8x1xf32> -> vector<8x1xf32>
    %cst_41 = arith.constant 0.000000e+00 : f32
    %73 = vector.shape_cast %9 : vector<1x8xi1> to vector<1x8xi1>
    %74 = vector.broadcast %73 : vector<1x8xi1> to vector<8x8xi1>
    %75 = vector.broadcast %cst_41 : f32 to vector<8x8xf32>
    %76 = vector.shape_cast %72 : vector<8x1xf32> to vector<8x1xf32>
    %77 = vector.broadcast %76 : vector<8x1xf32> to vector<8x8xf32>
    %78 = arith.select %74, %75, %77 : vector<8x8xi1>, vector<8x8xf32>
    %79 = arith.mulf %69, %78 : vector<8x8xf32>
    %cst_42 = arith.constant dense<0.000000e+00> : vector<8x8xf32>
    %80 = tpu.matmul %79, %57, %cst_42 {dimension_numbers = #tpu.dot_dimension_numbers<[1], [0], [0], [1], [0, 0, 1, 1], [], []>} : vector<8x8xf32>, vector<8x8xf32>, vector<8x8xf32> -> vector<8x8xf32>
    %c8 = arith.constant 8 : index
    %c0_43 = arith.constant 0 : index
    %81 = vector.load %arg11[%c8, %c0_43] : memref<32x32xf32, #tpu.memory_space<vmem>>, vector<8x32xf32>
    %cst_44 = arith.constant dense<0.000000e+00> : vector<8x32xf32>
    %82 = tpu.matmul %80, %81, %cst_44 {dimension_numbers = #tpu.dot_dimension_numbers<[1], [0], [0], [1], [0, 0, 1, 1], [], []>} : vector<8x8xf32>, vector<8x32xf32>, vector<8x32xf32> -> vector<8x32xf32>
    %83 = arith.addf %54, %82 : vector<8x32xf32>
    %84 = vector.extract_strided_slice %14 {offsets = [0, 16], sizes = [8, 8], strides = [1, 1]} : vector<8x32xf32> to vector<8x8xf32>
    %85 = vector.extract_strided_slice %19 {offsets = [0, 16], sizes = [8, 8], strides = [1, 1]} : vector<8x32xf32> to vector<8x8xf32>
    %86 = vector.extract_strided_slice %24 {offsets = [0, 16], sizes = [8, 8], strides = [1, 1]} : vector<8x32xf32> to vector<8x8xf32>
    %cst_45 = arith.constant dense<0.000000e+00> : vector<8x8xf32>
    %87 = tpu.matmul %84, %85, %cst_45 {dimension_numbers = #tpu.dot_dimension_numbers<[1], [1], [0], [0], [0, 0, 1, 0], [], []>} : vector<8x8xf32>, vector<8x8xf32>, vector<8x8xf32> -> vector<8x8xf32>
    %cst_46 = arith.constant 0.353553385 : f32
    %88 = vector.broadcast %cst_46 : f32 to vector<8x8xf32>
    %89 = arith.mulf %87, %88 : vector<8x8xf32>
    %cst_47 = arith.constant -3.40282347E+38 : f32
    %90 = vector.shape_cast %9 : vector<1x8xi1> to vector<1x8xi1>
    %91 = vector.broadcast %90 : vector<1x8xi1> to vector<8x8xi1>
    %92 = vector.broadcast %cst_47 : f32 to vector<8x8xf32>
    %93 = arith.select %91, %92, %89 : vector<8x8xi1>, vector<8x8xf32>
    %cst_48 = arith.constant dense<0xFF800000> : vector<8xf32>
    %94 = vector.multi_reduction <maximumf>, %93, %cst_48 [1] : vector<8x8xf32> to vector<8xf32>
    %95 = vector.shape_cast %94 : vector<8xf32> to vector<8x1xf32>
    %96 = vector.broadcast %95 : vector<8x1xf32> to vector<8x8xf32>
    %97 = arith.subf %93, %96 : vector<8x8xf32>
    %98 = math.exp %97 : vector<8x8xf32>
    %cst_49 = arith.constant dense<0.000000e+00> : vector<8xf32>
    %99 = vector.multi_reduction <add>, %98, %cst_49 [1] : vector<8x8xf32> to vector<8xf32>
    %100 = vector.shape_cast %99 : vector<8xf32> to vector<8x1xf32>
    %101 = tpu.reciprocal %100 {approx = true} : vector<8x1xf32> -> vector<8x1xf32>
    %cst_50 = arith.constant 0.000000e+00 : f32
    %102 = vector.shape_cast %9 : vector<1x8xi1> to vector<1x8xi1>
    %103 = vector.broadcast %102 : vector<1x8xi1> to vector<8x8xi1>
    %104 = vector.broadcast %cst_50 : f32 to vector<8x8xf32>
    %105 = vector.shape_cast %101 : vector<8x1xf32> to vector<8x1xf32>
    %106 = vector.broadcast %105 : vector<8x1xf32> to vector<8x8xf32>
    %107 = arith.select %103, %104, %106 : vector<8x8xi1>, vector<8x8xf32>
    %108 = arith.mulf %98, %107 : vector<8x8xf32>
    %cst_51 = arith.constant dense<0.000000e+00> : vector<8x8xf32>
    %109 = tpu.matmul %108, %86, %cst_51 {dimension_numbers = #tpu.dot_dimension_numbers<[1], [0], [0], [1], [0, 0, 1, 1], [], []>} : vector<8x8xf32>, vector<8x8xf32>, vector<8x8xf32> -> vector<8x8xf32>
    %c16 = arith.constant 16 : index
    %c0_52 = arith.constant 0 : index
    %110 = vector.load %arg11[%c16, %c0_52] : memref<32x32xf32, #tpu.memory_space<vmem>>, vector<8x32xf32>
    %cst_53 = arith.constant dense<0.000000e+00> : vector<8x32xf32>
    %111 = tpu.matmul %109, %110, %cst_53 {dimension_numbers = #tpu.dot_dimension_numbers<[1], [0], [0], [1], [0, 0, 1, 1], [], []>} : vector<8x8xf32>, vector<8x32xf32>, vector<8x32xf32> -> vector<8x32xf32>
    %112 = arith.addf %83, %111 : vector<8x32xf32>
    %113 = vector.extract_strided_slice %14 {offsets = [0, 24], sizes = [8, 8], strides = [1, 1]} : vector<8x32xf32> to vector<8x8xf32>
    %114 = vector.extract_strided_slice %19 {offsets = [0, 24], sizes = [8, 8], strides = [1, 1]} : vector<8x32xf32> to vector<8x8xf32>
    %115 = vector.extract_strided_slice %24 {offsets = [0, 24], sizes = [8, 8], strides = [1, 1]} : vector<8x32xf32> to vector<8x8xf32>
    %cst_54 = arith.constant dense<0.000000e+00> : vector<8x8xf32>
    %116 = tpu.matmul %113, %114, %cst_54 {dimension_numbers = #tpu.dot_dimension_numbers<[1], [1], [0], [0], [0, 0, 1, 0], [], []>} : vector<8x8xf32>, vector<8x8xf32>, vector<8x8xf32> -> vector<8x8xf32>
    %cst_55 = arith.constant 0.353553385 : f32
    %117 = vector.broadcast %cst_55 : f32 to vector<8x8xf32>
    %118 = arith.mulf %116, %117 : vector<8x8xf32>
    %cst_56 = arith.constant -3.40282347E+38 : f32
    %119 = vector.shape_cast %9 : vector<1x8xi1> to vector<1x8xi1>
    %120 = vector.broadcast %119 : vector<1x8xi1> to vector<8x8xi1>
    %121 = vector.broadcast %cst_56 : f32 to vector<8x8xf32>
    %122 = arith.select %120, %121, %118 : vector<8x8xi1>, vector<8x8xf32>
    %cst_57 = arith.constant dense<0xFF800000> : vector<8xf32>
    %123 = vector.multi_reduction <maximumf>, %122, %cst_57 [1] : vector<8x8xf32> to vector<8xf32>
    %124 = vector.shape_cast %123 : vector<8xf32> to vector<8x1xf32>
    %125 = vector.broadcast %124 : vector<8x1xf32> to vector<8x8xf32>
    %126 = arith.subf %122, %125 : vector<8x8xf32>
    %127 = math.exp %126 : vector<8x8xf32>
    %cst_58 = arith.constant dense<0.000000e+00> : vector<8xf32>
    %128 = vector.multi_reduction <add>, %127, %cst_58 [1] : vector<8x8xf32> to vector<8xf32>
    %129 = vector.shape_cast %128 : vector<8xf32> to vector<8x1xf32>
    %130 = tpu.reciprocal %129 {approx = true} : vector<8x1xf32> -> vector<8x1xf32>
    %cst_59 = arith.constant 0.000000e+00 : f32
    %131 = vector.shape_cast %9 : vector<1x8xi1> to vector<1x8xi1>
    %132 = vector.broadcast %131 : vector<1x8xi1> to vector<8x8xi1>
    %133 = vector.broadcast %cst_59 : f32 to vector<8x8xf32>
    %134 = vector.shape_cast %130 : vector<8x1xf32> to vector<8x1xf32>
    %135 = vector.broadcast %134 : vector<8x1xf32> to vector<8x8xf32>
    %136 = arith.select %132, %133, %135 : vector<8x8xi1>, vector<8x8xf32>
    %137 = arith.mulf %127, %136 : vector<8x8xf32>
    %cst_60 = arith.constant dense<0.000000e+00> : vector<8x8xf32>
    %138 = tpu.matmul %137, %115, %cst_60 {dimension_numbers = #tpu.dot_dimension_numbers<[1], [0], [0], [1], [0, 0, 1, 1], [], []>} : vector<8x8xf32>, vector<8x8xf32>, vector<8x8xf32> -> vector<8x8xf32>
    %c24 = arith.constant 24 : index
    %c0_61 = arith.constant 0 : index
    %139 = vector.load %arg11[%c24, %c0_61] : memref<32x32xf32, #tpu.memory_space<vmem>>, vector<8x32xf32>
    %cst_62 = arith.constant dense<0.000000e+00> : vector<8x32xf32>
    %140 = tpu.matmul %138, %139, %cst_62 {dimension_numbers = #tpu.dot_dimension_numbers<[1], [0], [0], [1], [0, 0, 1, 1], [], []>} : vector<8x8xf32>, vector<8x32xf32>, vector<8x32xf32> -> vector<8x32xf32>
    %141 = arith.addf %112, %140 : vector<8x32xf32>
    %c0_63 = arith.constant 0 : index
    %c0_64 = arith.constant 0 : index
    %142 = vector.load %arg12[%c0_63, %c0_64] : memref<1x32xf32, #tpu.memory_space<vmem>>, vector<1x32xf32>
    %143 = vector.broadcast %142 : vector<1x32xf32> to vector<8x32xf32>
    %144 = arith.addf %141, %143 : vector<8x32xf32>
    %c0_65 = arith.constant 0 : index
    %c0_66 = arith.constant 0 : index
    %c0_67 = arith.constant 0 : index
    %145 = vector.load %arg13[%c0_65, %c0_66, %c0_67] : memref<1x8x32xf32, #tpu.memory_space<vmem>>, vector<1x8x32xf32>
    %146 = vector.shape_cast %145 : vector<1x8x32xf32> to vector<8x32xf32>
    %147 = vector.shape_cast %144 : vector<8x32xf32> to vector<1x8x32xf32>
    tpu.vector_store %arg13[%c0_65, %c0_66, %c0_67], %147 {strides = array<i32>} : memref<1x8x32xf32, #tpu.memory_space<vmem>>, vector<1x8x32xf32>,
    return
  }
  func.func @transform_0(%arg0: i32) -> (i32, i32, i32) {
    %c0_i32 = arith.constant 0 : i32
    %c0_i32_0 = arith.constant 0 : i32
    %c0_i32_1 = arith.constant 0 : i32
    return %arg0, %c0_i32, %c0_i32_0 : i32, i32, i32
  }
  func.func @transform_1(%arg0: i32) -> (i32, i32, i32) {
    %c0_i32 = arith.constant 0 : i32
    %c0_i32_0 = arith.constant 0 : i32
    %c0_i32_1 = arith.constant 0 : i32
    return %arg0, %c0_i32, %c0_i32_0 : i32, i32, i32
  }
  func.func @transform_2(%arg0: i32) -> (i32, i32, i32) {
    %c0_i32 = arith.constant 0 : i32
    %c0_i32_0 = arith.constant 0 : i32
    %c0_i32_1 = arith.constant 0 : i32
    return %arg0, %c0_i32, %c0_i32_0 : i32, i32, i32
  }
  func.func @transform_3(%arg0: i32) -> (i32, i32, i32) {
    %c0_i32 = arith.constant 0 : i32
    %c0_i32_0 = arith.constant 0 : i32
    %c0_i32_1 = arith.constant 0 : i32
    return %arg0, %c0_i32, %c0_i32_0 : i32, i32, i32
  }
  func.func @transform_4(%arg0: i32) -> (i32, i32) {
    %c0_i32 = arith.constant 0 : i32
    %c0_i32_0 = arith.constant 0 : i32
    %c0_i32_1 = arith.constant 0 : i32
    return %c0_i32, %c0_i32_0 : i32, i32
  }
  func.func @transform_5(%arg0: i32) -> (i32, i32) {
    %c0_i32 = arith.constant 0 : i32
    %c0_i32_0 = arith.constant 0 : i32
    %c0_i32_1 = arith.constant 0 : i32
    return %c0_i32, %c0_i32_0 : i32, i32
  }
  func.func @transform_6(%arg0: i32) -> (i32, i32) {
    %c0_i32 = arith.constant 0 : i32
    %c0_i32_0 = arith.constant 0 : i32
    %c0_i32_1 = arith.constant 0 : i32
    return %c0_i32, %c0_i32_0 : i32, i32
  }
  func.func @transform_7(%arg0: i32) -> (i32, i32) {
    %c0_i32 = arith.constant 0 : i32
    %c0_i32_0 = arith.constant 0 : i32
    %c0_i32_1 = arith.constant 0 : i32
    return %c0_i32, %c0_i32_0 : i32, i32
  }
  func.func @transform_8(%arg0: i32) -> (i32, i32) {
    %c0_i32 = arith.constant 0 : i32
    %c0_i32_0 = arith.constant 0 : i32
    %c0_i32_1 = arith.constant 0 : i32
    return %c0_i32, %c0_i32_0 : i32, i32
  }
  func.func @transform_9(%arg0: i32) -> (i32, i32) {
    %c0_i32 = arith.constant 0 : i32
    %c0_i32_0 = arith.constant 0 : i32
    %c0_i32_1 = arith.constant 0 : i32
    return %c0_i32, %c0_i32_0 : i32, i32
  }
  func.func @transform_10(%arg0: i32) -> (i32, i32) {
    %c0_i32 = arith.constant 0 : i32
    %c0_i32_0 = arith.constant 0 : i32
    %c0_i32_1 = arith.constant 0 : i32
    return %c0_i32, %c0_i32_0 : i32, i32
  }
  func.func @transform_11(%arg0: i32) -> (i32, i32) {
    %c0_i32 = arith.constant 0 : i32
    %c0_i32_0 = arith.constant 0 : i32
    %c0_i32_1 = arith.constant 0 : i32
    return %c0_i32, %c0_i32_0 : i32, i32
  }
  func.func @transform_12(%arg0: i32) -> (i32, i32, i32) {
    %c0_i32 = arith.constant 0 : i32
    %c0_i32_0 = arith.constant 0 : i32
    %c0_i32_1 = arith.constant 0 : i32
    return %arg0, %c0_i32, %c0_i32_0 : i32, i32, i32
  }
}

</mosaic_0001>

<bundles_post_ra>
// kernel: tpu_custom_call.1
= control target key start
LH: loop header
LB: loop body
LE: loop exit
PB: predicated region body
PF: predicated region fallthrough
CT: control target
= control target key end

     0   :  { %s3090_s0 = inlined_call_operand.hbm [shape: f32[2,8,32], index: 0, kind: input, shape index: {}]   ;;  %s3091_s1 = inlined_call_operand.hbm [shape: f32[2,8,32], index: 1, kind: input, shape index: {}]   ;;  %s3092_s2 = inlined_call_operand.hbm [shape: f32[2,8,32], index: 2, kind: input, shape index: {}]   ;;  %s3093_s3 = inlined_call_operand.vmem [shape: s32[2,1,8], index: 3, kind: input, shape index: {}]   ;;  %s3094_s4 = inlined_call_operand.hbm [shape: f32[32,32], index: 4, kind: input, shape index: {}]   ;;  %s3095_s5 = inlined_call_operand.vmem [shape: f32[1,32], index: 5, kind: input, shape index: {}]   ;;  %s3096_s6 = inlined_call_operand.hbm [shape: f32[32,32], index: 6, kind: input, shape index: {}]   ;;  %s3097_s7 = inlined_call_operand.vmem [shape: f32[1,32], index: 7, kind: input, shape index: {}]   ;;  %s3098_s8 = inlined_call_operand.hbm [shape: f32[32,32], index: 8, kind: input, shape index: {}]   ;;  %s3099_s9 = inlined_call_operand.vmem [shape: f32[1,32], index: 9, kind: input, shape index: {}]   ;;  %s3100_s10 = inlined_call_operand.vmem [shape: f32[32,32], index: 10, kind: input, shape index: {}]   ;;  %s3101_s11 = inlined_call_operand.vmem [shape: f32[1,32], index: 11, kind: input, shape index: {}]   ;;  %s3102_s12 = inlined_call_operand.hbm [shape: f32[2,8,32], index: 12, kind: output, shape index: {}]  }
   0x1   :  { %3129 = sst [smem:[#allocation25_spill]] %s3091_s1 }
   0x2   :  { %3130 = sst [smem:[#allocation26_spill]] %s3093_s3 }
   0x3   :  { %3131 = sst [smem:[#allocation27_spill]] %s3094_s4 }
   0x4   :  { %3132 = sst [smem:[#allocation28_spill]] %s3099_s9 }
   0x5   :  { %3133 = sst [smem:[#allocation29_spill]] %s3100_s10 }
   0x6   :  { %3134 = sst [smem:[#allocation30_spill]] %s3101_s11 }
   0x7   :  { %3135 = sst [smem:[#allocation31_spill]] %s3102_s12 }
   0x8   :  { %17 = vsyncpa [#allocation3], 0 }
   0x9   :  { %19 = vsyncpa [#allocation3 + $0x1], 0 }
   0xa   :  { %20 = vsyncpa [#allocation6], 0 }
   0xb   :  { %22 = vsyncpa [#allocation6 + $0x1], 0 }
   0xc   :  { %23 = vsyncpa [#allocation9], 0 }
   0xd   :  { %24 = vsyncpa [#allocation12], 0 }
   0xe   :  { %25 = vsyncpa [#allocation4], 0 }
   0xf   :  { %27 = vsyncpa [#allocation4 + $0x1], 0  ;;  %s2607_s21 = smov 0   ;;  %s2609_s22 = smov 0  }
  0x10   :  { %s2611_s23 = smov 0   ;;  %s2613_s24 = smov 0  }
  0x11 LB: > { %3136 = sst [smem:[#allocation19_spill]] %s2512_s21  ;;  %s2628_s25 = sadd.s32 4294967295, %s2524_s24   ;;  %s2524_s24 = sphi %s2613_s24, %s3179_s24   ;;  %s2520_s23 = sphi %s2611_s23, %s3183_s23   ;;  %s2516_s22 = sphi %s2609_s22, %s3182_s22   ;;  %s2512_s21 = sphi %s2607_s21, %s3181_s21  }
  0x12   : > { %3137 = sst [smem:[#allocation20_spill]] %s2524_s24  ;;  %s1963_s26 = sadd.s32 4294967294, %s2524_s24  }
  0x13   : > { %p53_p0 = scmp.ne.s32.totalorder %s2516_s22, %s2512_s21  ;;  %p3106_p1 = scmp.eq.s32.totalorder %s2628_s25, 0 }
  0x14   : > { %p329_p3 = scmp.eq.s32.totalorder %s1963_s26, 1  ;;  %p1964_p5 = scmp.ge.s32.totalorder %s2524_s24, 1 }
  0x15   : > { %p2637_p4 = por %p3106_p1, %p53_p0  ;;  %p336_p7 = scmp.lt.s32.totalorder %s2524_s24, 3 }
  0x16   : > { %p2642_p6 = por %p329_p3, %p53_p0  ;;  %s2526_s30 = smov [#allocation8]  }
  0x17   : > { %s3138_s27 = scalar_select %p2637_p4, 1, 0 }
  0x18   : > { %s3139_s28 = scalar_select %p2642_p6, 1, 0 }
  0x19   : > { %p2647_p8 = pnand %p1964_p5, %p336_p7  ;;  %s348_s13 = sshll.u32 %s2526_s30, 4  ;;  %s2651_s13 = int_to_ptr.vmem [resolvable:$true] %s348_s13 }
  0x1a   : > { %3140 = sst [smem:[#allocation21_spill]] %s3139_s28  ;;  %s2663_s15 = sadd.s32 1, %s2524_s24  }
  0x1b   : > { %s3141_s29 = scalar_select %p2647_p8, 1, 0 }
  0x1c   : > { %p2180_p9 = pneg %p2647_p8  ;;  %3143 = sst [smem:[#allocation22_spill]] %s2663_s15 }
  0x1d   : > { %s40_s16 = sadd.s32 1, %s2520_s23  ;;  %s37_s17 = ssub.s32 %s2524_s24, %s2663_s15 }
  0x1e   : > { %p2658_p11 = pnand %p2180_p9, %p3106_p1  ;;  %s3144_s4 = sld [smem:[#allocation27_spill]] }
  0x20   : > { %s3142_s14 = scalar_select %p2658_p11, 1, 0 }
  0x21   : > { %p2676_p13 = pneg %p2658_p11 }
  0x23   : > { %s3145_s28 = scalar_select %p2676_p13, 1, 0 }
  0x24   : > { %s2272_s20 = scalar_lea.hbm %s3144_s4, 512 }
  0x25   : > { %p2273_p12 = scmp.ne.s32.totalorder %s3144_s4, %s2272_s20  ;;  %p2279_p5 = scmp.lt.u32.totalorder %s2272_s20, %s3144_s4 }
  0x27   : > { %p2275_p0 = pnand %p2676_p13, %p2273_p12 }
  0x29   : > { %p2276_p3 = pneg %p2275_p0 }
  0x2b   : > { %p2281_p7 = pnand %p2279_p5, %p2276_p3 }
  0x2d   : > { %2284 = shalt.err (!%p2281_p7)
}
  0x2e   : > { %s2285_s18 = scalar_lea.vmem %s2651_s13, 512  ;;  %p2293_p2 = scmp.lt.s32.totalorder %s2651_s13, %s2651_s13 }
  0x2f   : > { %p2286_p9 = scmp.ne.s32.totalorder %s2651_s13, %s2285_s18  ;;  %p2294_p6 = scmp.lt.s32.totalorder %s2285_s18, %s2285_s18 }
  0x31   : > { %p2288_p10 = pnand %p2286_p9, %p2676_p13  ;;  %p2295_p12 = por %p2294_p6, %p2293_p2 }
  0x33   : > { %p2289_p1 = pneg %p2288_p10 }
  0x35   : > { %p2296_p0 = pnand %p2295_p12, %p2289_p1 }
  0x37   : > { %2299 = shalt.err (!%p2296_p0)
}
  0x38   : > { %s3109_s19 = smov 128   ;;  %s3111_s12 = smov 8  }
  0x39   : > { %2183 = dma.hbm_to_vmem [thread:$0]  (!%p2658_p11), %s3144_s4, 512, %s2651_s13, [#allocation9], %s3109_s19, %s3109_s19, %s3111_s12  }
  0x3a   : > { %p38_p1 = scmp.eq.s32.totalorder %s37_s17, 0  ;;  %p47_p2 = scmp.ne.s32.totalorder %s2520_s23, %s2516_s22 }
  0x3b   : > { %p48_p6 = scmp.eq.s32.totalorder %s2524_s24, 0  ;;  %p2207_p10 = scmp.lt.s32.totalorder %s2524_s24, 2 }
  0x3c   : > { %s2705_s26 = scalar_select %p38_p1, %s2520_s23, %s40_s16  }
  0x3d   : > { %p49_p3 = por %p48_p6, %p47_p2  ;;  %p3147_p5 = scmp.eq.s32.totalorder %s2628_s25, 1 }
  0x3e   : > { %3146 = sst [smem:[#allocation23_spill]] %s2705_s26  ;;  %s3113_s18 = sand.u32 1, %s2520_s23  }
  0x3f   : > { %p2709_p7 = por %p3147_p5, %p47_p2  ;;  %s2715_s15 = sshll.u32 %s2524_s24, 7 }
  0x40   : > { %s2719_s11 = sshll.u32 %s3113_s18, 3  ;;  %p2721_p9 = pnand %p2207_p10, %p49_p3 }
  0x41   : > { %s3148_s30 = scalar_select %p2709_p7, 1, 0 }
  0x42   : > { %s3150_s13 = scalar_select %p2721_p9, 1, 0 }
  0x43   : > { %3149 = sst [smem:[#allocation24_spill]] %s3148_s30  ;;  %s421_s16 = sand.u32 1, %s2524_s24  }
  0x44   : > { %s3151_s1 = sld [smem:[#allocation25_spill]]  ;;  %s425_s19 = scalar_lea.vmem [#allocation5], %s2719_s11 }
  0x45   : > { %s432_s12 = sshll.u32 %s425_s19, 4  ;;  %s2735_s18 = scalar_lea.sflag [#allocation6], %s421_s16  ;;  %s2733_s12 = int_to_ptr.vmem [resolvable:$true] %s432_s12 }
  0x46   : > { %p2741_p0 = pneg %p2721_p9 }
  0x48   : > { %s3152_s26 = scalar_select %p2741_p0, 1, 0 }
  0x4a   : > { %s2730_s20 = scalar_lea.hbm %s3151_s1, %s2715_s15  ;;  %s2305_s24 = scalar_lea.hbm %s3151_s1, 256 }
  0x4b   : > { %s2300_s4 = scalar_lea.hbm %s2730_s20, 128  ;;  %p2306_p6 = scmp.lt.u32.totalorder %s2730_s20, %s3151_s1 }
  0x4c   : > { %p2301_p12 = scmp.ne.s32.totalorder %s2730_s20, %s2300_s4  ;;  %p2307_p10 = scmp.lt.u32.totalorder %s2305_s24, %s2300_s4 }
  0x4d   : > { %p2309_p5 = scmp.lt.u32.totalorder %s2300_s4, %s2730_s20 }
  0x4e   : > { %p2303_p1 = pnand %p2741_p0, %p2301_p12  ;;  %p2308_p3 = por %p2307_p10, %p2306_p6 }
  0x50   : > { %p2304_p2 = pneg %p2303_p1  ;;  %p2310_p7 = por %p2309_p5, %p2308_p3 }
  0x52   : > { %p2311_p4 = pnand %p2310_p7, %p2304_p2 }
  0x54   : > { %2314 = shalt.err (!%p2311_p4)
}
  0x55   : > { %s2315_s16 = scalar_lea.vmem %s2733_s12, 128  ;;  %s2529_s17 = smov [#allocation5]  }
  0x56   : > { %p2316_p12 = scmp.ne.s32.totalorder %s2733_s12, %s2315_s16  ;;  %s2320_s21 = sshll.u32 %s2529_s17, 4  ;;  %s2321_s21 = int_to_ptr.vmem [resolvable:$false] %s2320_s21 }
  0x57   : > { %s2322_s30 = scalar_lea.vmem %s2321_s21, 256  ;;  %p2323_p11 = scmp.lt.s32.totalorder %s2733_s12, %s2321_s21 }
  0x58   : > { %p2318_p1 = pnand %p2316_p12, %p2741_p0  ;;  %p2324_p13 = scmp.lt.s32.totalorder %s2322_s30, %s2315_s16 }
  0x5a   : > { %p2319_p8 = pneg %p2318_p1  ;;  %p2325_p6 = por %p2324_p13, %p2323_p11 }
  0x5c   : > { %p2326_p10 = pnand %p2325_p6, %p2319_p8 }
  0x5e   : > { %2329 = shalt.err (!%p2326_p10)
}
  0x5f   : > { %2196 = dma.hbm_to_vmem [thread:$0]  (!%p2721_p9), %s2730_s20, 128, %s2733_s12, %s2735_s18  }
  0x60   : > { %s2530_s4 = smov [#allocation10]   ;;  %s2531_s19 = smov [#allocation11]  }
  0x61   : > { %s364_s24 = sshll.u32 %s2530_s4, 4  ;;  %s380_s1 = sshll.u32 %s2531_s19, 4  ;;  %s365_s24 = int_to_ptr.vmem [resolvable:$true] %s364_s24  ;;  %s381_s1 = int_to_ptr.vmem [resolvable:$true] %s380_s1 }
  0x62   : > { %s2330_s21 = scalar_lea.hbm %s3096_s6, 512  ;;  %p3153_p8 = scmp.ne.s32.totalorder %s3145_s28, 0 }
  0x63   : > { %p2331_p4 = scmp.ne.s32.totalorder %s3096_s6, %s2330_s21  ;;  %p2337_p7 = scmp.lt.u32.totalorder %s2330_s21, %s3096_s6 }
  0x65   : > { %p2333_p11 = pnand %p2331_p4, %p3153_p8 }
  0x67   : > { %p2334_p13 = pneg %p2333_p11 }
  0x69   : > { %p2339_p2 = pnand %p2337_p7, %p2334_p13 }
  0x6b   : > { %2342 = shalt.err (!%p2339_p2)
}
  0x6c   : > { %s2343_s12 = scalar_lea.vmem %s365_s24, 512  ;;  %p2351_p1 = scmp.lt.s32.totalorder %s365_s24, %s365_s24 }
  0x6d   : > { %p2344_p3 = scmp.ne.s32.totalorder %s365_s24, %s2343_s12  ;;  %p2352_p6 = scmp.lt.s32.totalorder %s2343_s12, %s2343_s12 }
  0x6f   : > { %p2346_p5 = pnand %p2344_p3, %p3153_p8  ;;  %p2353_p10 = por %p2352_p6, %p2351_p1 }
  0x71   : > { %p2347_p12 = pneg %p2346_p5 }
  0x73   : > { %p2354_p9 = pnand %p2353_p10, %p2347_p12 }
  0x75   : > { %2357 = shalt.err (!%p2354_p9)
}
  0x76   : > { %p3154_p4 = scmp.ne.s32.totalorder %s3142_s14, 0  ;;  %s3155_s10 = smov 8  }
  0x77   : > { %s3156_s20 = smov 128   ;;  %s2358_s17 = scalar_lea.hbm %s3098_s8, 512 }
  0x78   : > { %2186 = dma.hbm_to_vmem [thread:$0]  (!%p3154_p4), %s3096_s6, 512, %s365_s24, [#allocation9], %s3156_s20, %s3156_s20, %s3155_s10  }
  0x79   : > { %p2359_p11 = scmp.ne.s32.totalorder %s3098_s8, %s2358_s17  ;;  %p2365_p7 = scmp.lt.u32.totalorder %s2358_s17, %s3098_s8 }
  0x7b   : > { %p2361_p9 = pnand %p2359_p11, %p3153_p8 }
  0x7d   : > { %p2362_p13 = pneg %p2361_p9 }
  0x7f   : > { %p2367_p2 = pnand %p2365_p7, %p2362_p13 }
  0x81   : > { %2370 = shalt.err (!%p2367_p2)
}
  0x82   : > { %s2371_s3 = scalar_lea.vmem %s381_s1, 512  ;;  %p2379_p1 = scmp.lt.s32.totalorder %s381_s1, %s381_s1 }
  0x83   : > { %p2372_p3 = scmp.ne.s32.totalorder %s381_s1, %s2371_s3  ;;  %p2380_p6 = scmp.lt.s32.totalorder %s2371_s3, %s2371_s3 }
  0x85   : > { %p2374_p5 = pnand %p2372_p3, %p3153_p8  ;;  %p2381_p10 = por %p2380_p6, %p2379_p1 }
  0x87   : > { %p2375_p12 = pneg %p2374_p5 }
  0x89   : > { %p2382_p0 = pnand %p2381_p10, %p2375_p12 }
  0x8b   : > { %2385 = shalt.err (!%p2382_p0)
}
  0x8c   : > { %2189 = dma.hbm_to_vmem [thread:$0]  (!%p3154_p4), %s3098_s8, 512, %s381_s1, [#allocation12], %s3156_s20, %s3156_s20, %s3155_s10  }
  0x8d   : > { %s2811_s19 = scalar_lea.hbm %s3090_s0, %s2715_s15  ;;  %s407_s14 = scalar_lea.vmem [#allocation2], %s2719_s11 }
  0x8e   : > { %s414_s17 = sshll.u32 %s407_s14, 4  ;;  %s2820_s30 = scalar_lea.hbm %s3092_s2, %s2715_s15  ;;  %s2814_s17 = int_to_ptr.vmem [resolvable:$true] %s414_s17 }
  0x8f   : > { %s3157_s12 = sand.u32 1, %s2520_s23   ;;  %s2386_s10 = scalar_lea.hbm %s2811_s19, 128 }
  0x90   : > { %s404_s1 = scalar_lea.sflag [#allocation3], %s3157_s12  ;;  %p2387_p0 = scmp.ne.s32.totalorder %s2811_s19, %s2386_s10 }
  0x91   : > { %p3158_p8 = scmp.ne.s32.totalorder %s3152_s26, 0  ;;  %s2391_s24 = scalar_lea.hbm %s3090_s0, 256 }
  0x92   : > { %p2392_p9 = scmp.lt.u32.totalorder %s2811_s19, %s3090_s0  ;;  %p2393_p13 = scmp.lt.u32.totalorder %s2391_s24, %s2386_s10 }
  0x93   : > { %p2389_p4 = pnand %p2387_p0, %p3158_p8  ;;  %p2395_p2 = scmp.lt.u32.totalorder %s2386_s10, %s2811_s19 }
  0x94   : > { %p2394_p7 = por %p2393_p13, %p2392_p9 }
  0x95   : > { %p2390_p11 = pneg %p2389_p4 }
  0x96   : > { %p2396_p3 = por %p2395_p2, %p2394_p7 }
  0x98   : > { %p2397_p5 = pnand %p2396_p3, %p2390_p11 }
  0x9a   : > { %2400 = shalt.err (!%p2397_p5)
}
  0x9b   : > { %s2401_s15 = scalar_lea.vmem %s2814_s17, 128  ;;  %s2532_s4 = smov [#allocation2]  }
  0x9c   : > { %p2402_p12 = scmp.ne.s32.totalorder %s2814_s17, %s2401_s15  ;;  %s2406_s14 = sshll.u32 %s2532_s4, 4  ;;  %s2407_s14 = int_to_ptr.vmem [resolvable:$false] %s2406_s14 }
  0x9d   : > { %s2408_s21 = scalar_lea.vmem %s2407_s14, 256  ;;  %p2409_p10 = scmp.lt.s32.totalorder %s2814_s17, %s2407_s14 }
  0x9e   : > { %p2404_p1 = pnand %p2402_p12, %p3158_p8  ;;  %p2410_p0 = scmp.lt.s32.totalorder %s2408_s21, %s2401_s15 }
  0xa0   : > { %p2405_p6 = pneg %p2404_p1  ;;  %p2411_p4 = por %p2410_p0, %p2409_p10 }
  0xa2   : > { %p2412_p9 = pnand %p2411_p4, %p2405_p6 }
  0xa4   : > { %2415 = shalt.err (!%p2412_p9)
}
  0xa5   : > { %p3159_p11 = scmp.ne.s32.totalorder %s3150_s13, 0  ;;  %s443_s16 = scalar_lea.vmem [#allocation7], %s2719_s11 }
  0xa6   : > { %s450_s12 = sshll.u32 %s443_s16, 4  ;;  %s2416_s10 = scalar_lea.hbm %s2820_s30, 128  ;;  %s451_s12 = int_to_ptr.vmem [resolvable:$true] %s450_s12 }
  0xa7   : > { %2193 = dma.hbm_to_vmem [thread:$0]  (!%p3159_p11), %s2811_s19, 128, %s2814_s17, %s404_s1  }
  0xa8   : > { %p2417_p13 = scmp.ne.s32.totalorder %s2820_s30, %s2416_s10  ;;  %s2421_s24 = scalar_lea.hbm %s3092_s2, 256 }
  0xa9   : > { %p2422_p3 = scmp.lt.u32.totalorder %s2820_s30, %s3092_s2  ;;  %p2423_p5 = scmp.lt.u32.totalorder %s2421_s24, %s2416_s10 }
  0xaa   : > { %p2419_p7 = pnand %p2417_p13, %p3158_p8  ;;  %p2425_p1 = scmp.lt.u32.totalorder %s2416_s10, %s2820_s30 }
  0xab   : > { %p2424_p12 = por %p2423_p5, %p2422_p3 }
  0xac   : > { %p2420_p2 = pneg %p2419_p7 }
  0xad   : > { %p2426_p6 = por %p2425_p1, %p2424_p12 }
  0xaf   : > { %p2427_p10 = pnand %p2426_p6, %p2420_p2 }
  0xb1   : > { %2430 = shalt.err (!%p2427_p10)
}
  0xb2   : > { %s2431_s11 = scalar_lea.vmem %s451_s12, 128  ;;  %s2533_s19 = smov [#allocation7]  }
  0xb3   : > { %p2432_p0 = scmp.ne.s32.totalorder %s451_s12, %s2431_s11  ;;  %s2436_s17 = sshll.u32 %s2533_s19, 4  ;;  %s2437_s17 = int_to_ptr.vmem [resolvable:$false] %s2436_s17 }
  0xb4   : > { %s2438_s1 = scalar_lea.vmem %s2437_s17, 256  ;;  %p2439_p13 = scmp.lt.s32.totalorder %s451_s12, %s2437_s17 }
  0xb5   : > { %p2434_p4 = pnand %p2432_p0, %p3158_p8  ;;  %p2440_p7 = scmp.lt.s32.totalorder %s2438_s1, %s2431_s11 }
  0xb7   : > { %p2435_p9 = pneg %p2434_p4  ;;  %p2441_p11 = por %p2440_p7, %p2439_p13 }
  0xb9   : > { %p2442_p3 = pnand %p2441_p11, %p2435_p9 }
  0xbb   : > { %2445 = shalt.err (!%p2442_p3)
}
  0xbc   : > { %p3160_p5 = scmp.ne.s32.totalorder %s3150_s13, 0  ;;  %p3161_p2 = scmp.ne.s32.totalorder %s3141_s29, 0 }
  0xbd   : > { %s2867_s26 = sand.u32 (!%p3161_p2), 1, %s2516_s22   ;;  %p3162_p8 = scmp.ne.s32.totalorder (!%p3161_p2), %s3138_s27, 0 }
  0xbe   : > { %2199 = dma.hbm_to_vmem [thread:$0]  (!%p3160_p5), %s2820_s30, 128, %s451_s12, %s2735_s18  }
  0xbf   : > { %465 = sbr.rel (%p3161_p2) target bundleno = 2803 (0xaf3), region = 68  ;;  %s2870_s15 = sshll.u32 (!%p3161_p2), %s2867_s26, 3 }
  0xc0   : > { %s468_s4 = scalar_lea.sflag (!%p3161_p2), [#allocation3], %s2867_s26  ;;  %s471_s14 = scalar_lea.vmem (!%p3161_p2), [#allocation2], %s2870_s15 }
  0xc6   : > { %2491 = dma.done.wait (%p3162_p8), %s468_s4, 128  }
  0xc7   : > { %2493 = vsyncadd (%p3162_p8), %s468_s4, 4294967168  ;;  %s476_s29 = sand.u32 1, %s2628_s25   ;;  %s480_s13 = scalar_lea.vmem [#allocation5], %s2870_s15 }
  0xc8   : > { %s477_s18 = scalar_lea.sflag [#allocation6], %s476_s29 }
  0xc9   : > { %2495 = dma.done.wait (%p3162_p8), %s477_s18, 256  }
  0xca   : > { %2497 = vsyncadd (%p3162_p8), %s477_s18, 4294967040  ;;  %s489_s30 = scalar_lea.vmem [#allocation7], %s2870_s15  ;;  %p3163_p11 = scmp.eq.s32.totalorder %s2628_s25, 0 }
  0xcc   : > { %2499 = dma.done.wait (%p3163_p11), [#allocation9], 1024   ;;  %p3164_p12 = pmov %p3163_p11 }
  0xcd   : > { %p3165_p1 = pmov %p3163_p11 }
  0xce   : > { %2501 = vsyncadd (%p3164_p12), [#allocation9], 4294966272 }
  0xcf   : > { %2503 = dma.done.wait (%p3165_p1), [#allocation12], 512   ;;  %p3166_p6 = pmov %p3165_p1 }
  0xd0   : > { %v2534_v0 = vmov 0.0|0.0   ;;  %vm2535_vm0 = vmmov 0   ;;  %v2536_v1 = vmov 0.0   ;;  %v648_v2 = vld [vmem:[#allocation10] sm:$0xff]  ;;  %v649_v3 = vld [vmem:[#allocation10 + $0x8] sm:$0xff]  ;;  %v650_v7 = vld [vmem:[#allocation10 + $0x10] sm:$0xff]  ;;  %v895_v35 = vlaneseq }
  0xd1   : > { %2505 = vsyncadd (%p3166_p6), [#allocation12], 4294966784  ;;  %2148 = vmatprep.subr.bf16.mxu1 %v2534_v0  ;;  %2142 = vmatprep.subr.bf16.mxu0 %v2534_v0  ;;  %v563_v4 = vld [vmem:[#allocation8] sm:$0xff]  ;;  %v2149_v5 = vpack.c.bf16 %v649_v3, %v648_v2  ;;  %v564_v6 = vld [vmem:[#allocation8 + $0x8] sm:$0xff]  ;;  %vm574_vm1 = vcmask 261120   ;;  %vm816_vm2 = vcmask 64512  }
  0xd2   : > { %2068 = vmatprep.mubr.msk.f32.mxu1 %vm2535_vm0, %v2536_v1  ;;  %2057 = vmatprep.mubr.msk.f32.mxu0 %vm2535_vm0, %v2536_v1  ;;  %v651_v8 = vld [vmem:[#allocation10 + $0x18] sm:$0xff]  ;;  %v2143_v9 = vpack.c.bf16 %v564_v6, %v563_v4  ;;  %v565_v10 = vld [vmem:[#allocation8 + $0x10] sm:$0xff]  ;;  %v559_v14 = vld [vmem:[%s480_s13] sm:$0xff]  ;;  %s2537_s10 = smov 120   ;;  %p555_p10 = scmp.lt.s32.totalorder %s2628_s25, 1  ;;  %v896_v39 = vshrl.u32 %v895_v35, 7 }
  0xd3   : > { %v566_v11 = vld [vmem:[#allocation8 + $0x18] sm:$0xff]  ;;  %2150 = vmatpush3.bf16.msra.mxu1 %v2149_v5  ;;  %v2152_v12 = vpack.c.bf16 %v651_v8, %v650_v7  ;;  %v732_v16 = vld [vmem:[#allocation11] sm:$0xff]  ;;  %v733_v17 = vld [vmem:[#allocation11 + $0x8] sm:$0xff]  ;;  %s3167_s9 = sld [smem:[#allocation28_spill]]  ;;  %s3168_s19 = sld [smem:[#allocation26_spill]]  ;;  %v2538_v41 = vmov 0  }
  0xd4   : > { %2144 = vmatpush3.bf16.msra.mxu0 %v2143_v9  ;;  %2151 = vmatprep.subr.bf16.mxu1 %v2534_v0  ;;  %v2146_v13 = vpack.c.bf16 %v566_v11, %v565_v10  ;;  %v558_v15 = vld [vmem:[%s471_s14] sm:$0xff]  ;;  %v2155_v19 = vpack.c.bf16 %v733_v17, %v732_v16  ;;  %s556_s20 = scalar_select %p555_p10, %s2628_s25, 1  ;;  %v897_v40 = vsub.s32 0, %v896_v39 }
  0xd5   : > { %2145 = vmatprep.subr.bf16.mxu0 %v2534_v0  ;;  %v734_v18 = vld [vmem:[#allocation11 + $0x10] sm:$0xff]  ;;  %v735_v20 = vld [vmem:[#allocation11 + $0x18] sm:$0xff]  ;;  %s2539_s1 = smov 112   ;;  %s3169_s29 = sld [smem:[#allocation29_spill]] }
  0xd6   : > { %v2158_v21 = vpack.c.bf16 %v735_v20, %v734_v18  ;;  %v560_v22 = vld [vmem:[%s489_s30] sm:$0xff]  ;;  %s2540_s30 = smov 104   ;;  %s3171_s24 = sld [smem:[#allocation30_spill]] }
  0xd7   : > { %2153 = vmatpush3.bf16.msra.mxu1 %v2152_v12  ;;  %v1985_v23 = vld [vmem:[%s3097_s7] ss:$0 sm:$0xff]  ;;  %s554_s28 = scalar_lea.vmem [#allocation13], %s2870_s15  ;;  %s1799_s14 = scalar_lea.sflag [#allocation4], %s2867_s26 }
  0xd8   : > { %2147 = vmatpush3.bf16.msra.mxu0 %v2146_v13  ;;  %2082 = vmatprep.subr.mxu1 %v2536_v1  ;;  %v1983_v24 = vld [vmem:[%s3095_s5] ss:$0 sm:$0xff]  ;;  %s1812_s11 = sshll.u32 %s554_s28, 4  ;;  %s3047_s11 = int_to_ptr.vmem [resolvable:$true] %s1812_s11 }
  0xd9   : > { %2154 = vmatprep.subr.bf16.mxu0 %v2534_v0  ;;  %v1987_v33 = vld [vmem:[%s3167_s9] ss:$0 sm:$0xff]  ;;  %s557_s17 = scalar_lea.vmem %s3168_s19, %s556_s20  ;;  %s2007_s9 = sshll.u32 %s2628_s25, 7 }
  0xda   : > { %2069 = vmatmul.mubr.msk.f32.vlgmr.msra.gmra.mrb[0].mxu1 %vm574_vm1, %v559_v14  ;;  %v561_v38 = vld [vmem:[%s557_s17] sm:$0x1]  ;;  %s2446_s18 = scalar_lea.vmem %s3047_s11, 128  ;;  %s2541_s25 = smov [#allocation13]  }
  0xdb   : > { %2058 = vmatmul.mubr.msk.f32.vlgmr.msra.gmra.mrb[0].mxu0 %vm574_vm1, %v558_v15  ;;  %2084 = vmatprep.mubr.msk.f32.mxu1 %vm2535_vm0, %v2536_v1  ;;  %vm562_vm3 = vcmp.eq.s32.totalorder %v561_v38, 0  ;;  %v1156_v5 = vld [vmem:[%s3169_s29 + $0x8] sm:$0xff]  ;;  %v986_v11 = vld [vmem:[%s3169_s29] sm:$0xff]  ;;  %p2447_p0 = scmp.ne.s32.totalorder %s3047_s11, %s2446_s18  ;;  %s2450_s15 = sshll.u32 %s2541_s25, 4  ;;  %s2451_s15 = int_to_ptr.vmem [resolvable:$false] %s2450_s15 }
  0xdc   : > { %2079 = vmatprep.mubr.msk.f32.mxu0 %vm2535_vm0, %v2536_v1  ;;  %2156 = vmatpush3.bf16.msra.mxu0 %v2155_v19  ;;  %v894_v42 = vsel %vm562_vm3, 1, %v2538_v41  ;;  %s2452_s13 = scalar_lea.vmem %s2451_s15, 256  ;;  %p2453_p7 = scmp.lt.s32.totalorder %s3047_s11, %s2451_s15 }
  0xdd   : > { %2157 = vmatprep.subr.bf16.mxu0 %v2534_v0  ;;  %v2952_v43 = vrot.slane %v894_v42, %v897_v40  ;;  %p2454_p3 = scmp.lt.s32.totalorder %s2452_s13, %s2446_s18 }
  0xdf   : > { %vm899_vm4 = vcmp.eq.s32.totalorder %v2952_v43, 1  ;;  %p2455_p5 = por %p2454_p3, %p2453_p7 }
  0xe0   : > { %2159 = vmatpush3.bf16.msra.mxu0 %v2158_v21 }
  0xe1   : > { %2092 = vmatprep.subr.mxu0 %v2536_v1 }
  0xe3   : > { %2080 = vmatmul.mubr.msk.f32.vlgmr.msra.gmra.mrb[2].mxu0 %vm574_vm1, %v560_v22 }
  0xe4   : > { %2094 = vmatprep.mubr.msk.f32.mxu0 %vm2535_vm0, %v2536_v1 }
 0x1ad   : > { %v728_v25 = vpop.f32.mrb[0].mxu1 }
 0x1ae   : > { %v2920_v26 = vadd.f32 %v1985_v23, %v728_v25  ;;  %v2070_v27 = vpop.f32.mrb[1].mxu1  ;;  %v644_v28 = vpop.f32.mrb[0].mxu0 }
 0x1af   : > { %v2922_v29 = vadd.f32 %v1983_v24, %v644_v28  ;;  %v2059_v30 = vpop.f32.mrb[1].mxu0 }
 0x1b0   : > { %989 = vrot.lane.b32.xlu0 %v2920_v26, %s2537_s10  ;;  %2083 = vmatpush3.xpose.msk.msra.mxu1 %vm816_vm2, %v2920_v26 }
 0x1b1   : > { %2087 = vmatprep.subr.mxu1 %v2536_v1 }
 0x1b3   : > { %2085 = vmatmul.mubr.msk.f32.vlgmr.msra.gmra.mrb[2].mxu1 %vm816_vm2, %v2922_v29 }
 0x1b4   : > { %987 = vrot.lane.b32.xlu0 %v2922_v29, %s2537_s10  ;;  %2089 = vmatprep.mubr.msk.f32.mxu1 %vm2535_vm0, %v2536_v1 }
 0x1b6   : > { %v812_v34 = vpop.f32.mrb[2].mxu0 }
 0x1b7   : > { %v2948_v36 = vadd.f32 %v1987_v33, %v812_v34  ;;  %v2081_v37 = vpop.f32.mrb[3].mxu0 }
 0x1b9   : > { %2088 = vmatpush3.msra.mxu1 %v2948_v36 }
 0x1ba   : > { %2097 = vmatprep.subr.mxu1 %v2536_v1 }
 0x222   : > { %v990_v31 = vpop.permute.xlu0 %989 }
 0x223   : > { %2093 = vmatpush3.xpose.msk.msra.mxu0 %vm816_vm2, %v990_v31 }
 0x224   : > { %2102 = vmatprep.subr.mxu0 %v2536_v1 }
 0x226   : > { %v988_v32 = vpop.permute.xlu0 %987 }
 0x227   : > { %2095 = vmatmul.mubr.msk.f32.vlgmr.msra.gmra.mrb[4].mxu0 %vm816_vm2, %v988_v32 }
 0x228   : > { %2104 = vmatprep.mubr.msk.f32.mxu0 %vm2535_vm0, %v2536_v1  ;;  %2103 = vmatpush3.msra.mxu0 %v1156_v5 }
 0x229   : > { %2112 = vmatprep.subr.mxu0 %v2536_v1 }
 0x286   : > { %v889_v44 = vpop.f32.mrb[2].mxu1 }
 0x287   : > { %v893_v45 = vmul.f32 0.35355338, %v889_v44  ;;  %v2086_v46 = vpop.f32.mrb[3].mxu1 }
 0x289   : > { %v900_v47 = vsel %vm899_vm4, -3.4028235e+38, %v893_v45 }
 0x28a   : > { %v901_v48 = vsel %vm816_vm2, %v900_v47, -inf }
 0x28b   : > { %902 = vmax.xlane.f32.xlu1 %v901_v48 }
 0x2fa   : > { %v1061_v49 = vpop.f32.mrb[4].mxu0 }
 0x2fb   : > { %v1065_v50 = vmul.f32 0.35355338, %v1061_v49  ;;  %v2096_v51 = vpop.f32.mrb[5].mxu0 }
 0x2fd   : > { %v1066_v52 = vsel %vm899_vm4, -3.4028235e+38, %v1065_v50 }
 0x2fe   : > { %v1067_v53 = vsel %vm816_vm2, %v1066_v52, -inf }
 0x2ff   : > { %1068 = vmax.xlane.f32.xlu1 %v1067_v53 }
 0x318   : > { %v903_v54 = vpop.xlane.xlu1 %902 }
 0x319   : > { %v904_v55 = vsub.f32 %v900_v47, %v903_v54 }
 0x31b   : > { %v905_v56 = vmul.f32 1.442695, %v904_v55 }
 0x31d   : > { %2256 = vpow2.f32 %v905_v56 }
 0x327   : > { %v2257_v57 = vpop.eup %2256 }
 0x328   : > { %v907_v58 = vsel %vm816_vm2, %v2257_v57, 0.0 }
 0x329   : > { %908 = vadd.xlane.f32.xlu0 %v907_v58 }
 0x33f   : > { %1395 = vrot.lane.b32.xlu0 %v2948_v36, %s2539_s1 }
 0x38c   : > { %v1069_v59 = vpop.xlane.xlu1 %1068 }
 0x38d   : > { %v1070_v60 = vsub.f32 %v1066_v52, %v1069_v59 }
 0x38f   : > { %v1071_v61 = vmul.f32 1.442695, %v1070_v60 }
 0x391   : > { %2258 = vpow2.f32 %v1071_v61 }
 0x39b   : > { %v2259_v62 = vpop.eup %2258 }
 0x39c   : > { %v1073_v63 = vsel %vm816_vm2, %v2259_v62, 0.0 }
 0x39d   : > { %1074 = vadd.xlane.f32.xlu1 %v1073_v63 }
 0x3ae   : > { %1080 = vrot.lane.b32.xlu1 %v2948_v36, %s2537_s10  ;;  %s3170_s10 = sld [smem:[#allocation24_spill]] }
 0x3b2   : > { %1305 = vrot.lane.b32.xlu1 %v2920_v26, %s2539_s1 }
 0x3b4   : > { %p3173_p4 = scmp.ne.s32.totalorder %s3170_s10, 0 }
 0x3b6   : > { %v909_v0 = vpop.xlane.xlu0 %908  ;;  %1303 = vrot.lane.b32.xlu1 %v2922_v29, %s2539_s1  ;;  %s3172_s1 = sld [smem:[#allocation31_spill]]  ;;  %p2448_p9 = pnand %p2447_p0, %p3173_p4 }
 0x3b7   : > { %2260 = vrcp.f32 %v909_v0 }
 0x3b8   : > { %p2449_p13 = pneg %p2448_p9 }
 0x3ba   : > { %v1396_v13 = vpop.permute.xlu0 %1395  ;;  %p2456_p2 = pnand %p2455_p5, %p2449_p13 }
 0x3bc   : > { %s3045_s4 = scalar_lea.hbm %s3172_s1, %s2007_s9 }
 0x3c1   : > { %v2261_v2 = vpop.eup %2260 }
 0x3c2   : > { %v911_v3 = vsel %vm899_vm4, 0.0, %v2261_v2  ;;  %v2005_v2 = vld [vmem:[%s3171_s24] ss:$0 sm:$0xff] }
 0x3c3   : > { %v912_v4 = vmul.f32 %v2257_v57, %v911_v3 }
 0x3c5   : > { %2090 = vmatmul.mubr.msk.f32.vlgmr.msra.gmra.mrb[4].mxu1 %vm816_vm2, %v912_v4 }
 0x3c6   : > { %2099 = vmatprep.mubr.msk.f32.mxu1 %vm2535_vm0, %v2536_v1 }
 0x42a   : > { %v1075_v6 = vpop.xlane.xlu1 %1074 }
 0x42b   : > { %2262 = vrcp.f32 %v1075_v6 }
 0x42e   : > { %v1081_v7 = vpop.permute.xlu1 %1080 }
 0x42f   : > { %2098 = vmatpush3.msra.mxu1 %v1081_v7 }
 0x430   : > { %2107 = vmatprep.subr.mxu1 %v2536_v1 }
 0x432   : > { %v1306_v15 = vpop.permute.xlu1 %1305 }
 0x435   : > { %v2263_v8 = vpop.eup %2262 }
 0x436   : > { %v1077_v9 = vsel %vm899_vm4, 0.0, %v2263_v8  ;;  %v1304_v18 = vpop.permute.xlu1 %1303 }
 0x437   : > { %v1078_v10 = vmul.f32 %v2259_v62, %v1077_v9 }
 0x439   : > { %2100 = vmatmul.mubr.msk.f32.vlgmr.msra.gmra.mrb[6].mxu1 %vm816_vm2, %v1078_v10 }
 0x43a   : > { %2108 = vmatpush3.msra.mxu1 %v986_v11  ;;  %2109 = vmatprep.mubr.msk.f32.mxu1 %vm2535_vm0, %v2536_v1 }
 0x43b   : > { %2117 = vmatprep.subr.mxu1 %v2536_v1 }
 0x498   : > { %v982_v12 = vpop.f32.mrb[4].mxu1 }
 0x499   : > { %v2091_v14 = vpop.f32.mrb[5].mxu1  ;;  %2110 = vmatmul.mubr.msk.f32.vlgmr.msra.gmra.mrb[8].mxu1 %vm816_vm2, %v982_v12 }
 0x49a   : > { %2118 = vmatpush3.msra.mxu1 %v1396_v13  ;;  %2119 = vmatprep.mubr.msk.f32.mxu1 %vm2535_vm0, %v2536_v1 }
 0x49b   : > { %2127 = vmatprep.subr.mxu1 %v2536_v1 }
 0x50c   : > { %v1152_v16 = vpop.f32.mrb[6].mxu1 }
 0x50d   : > { %v2101_v17 = vpop.f32.mrb[7].mxu1  ;;  %2105 = vmatmul.mubr.msk.f32.vlgmr.msra.gmra.mrb[6].mxu0 %vm816_vm2, %v1152_v16 }
 0x50e   : > { %2113 = vmatpush3.xpose.msk.msra.mxu0 %vm816_vm2, %v1306_v15  ;;  %2114 = vmatprep.mubr.msk.f32.mxu0 %vm2535_vm0, %v2536_v1 }
 0x50f   : > { %2122 = vmatprep.subr.mxu0 %v2536_v1 }
 0x511   : > { %2115 = vmatmul.mubr.msk.f32.vlgmr.msra.gmra.mrb[8].mxu0 %vm816_vm2, %v1304_v18 }
 0x512   : > { %2124 = vmatprep.mubr.msk.f32.mxu0 %vm2535_vm0, %v2536_v1 }
 0x56c   : > { %v1299_v19 = vpop.f32.mrb[8].mxu1 }
 0x56d   : > { %v2111_v20 = vpop.f32.mrb[9].mxu1 }
 0x5e0   : > { %v1226_v21 = vpop.f32.mrb[6].mxu0 }
 0x5e1   : > { %v1300_v22 = vadd.f32 %v1299_v19, %v1226_v21  ;;  %v2106_v23 = vpop.f32.mrb[7].mxu0 }
 0x5e4   : > { %v1377_v24 = vpop.f32.mrb[8].mxu0 }
 0x5e5   : > { %v1381_v25 = vmul.f32 0.35355338, %v1377_v24  ;;  %v2116_v27 = vpop.f32.mrb[9].mxu0 }
 0x5e7   : > { %v1382_v28 = vsel %vm899_vm4, -3.4028235e+38, %v1381_v25 }
 0x5e8   : > { %v1383_v30 = vsel %vm816_vm2, %v1382_v28, -inf }
 0x5e9   : > { %1384 = vmax.xlane.f32.xlu1 %v1383_v30 }
 0x676   : > { %v1385_v31 = vpop.xlane.xlu1 %1384 }
 0x677   : > { %v1386_v32 = vsub.f32 %v1382_v28, %v1385_v31 }
 0x679   : > { %v1387_v33 = vmul.f32 1.442695, %v1386_v32 }
 0x67b   : > { %2264 = vpow2.f32 %v1387_v33 }
 0x685   : > { %v2265_v34 = vpop.eup %2264 }
 0x686   : > { %v1389_v35 = vsel %vm816_vm2, %v2265_v34, 0.0 }
 0x687   : > { %1390 = vadd.xlane.f32.xlu0 %v1389_v35 }
 0x69d   : > { %1548 = vrot.lane.b32.xlu0 %v2920_v26, %s2540_s30 }
 0x6a1   : > { %1546 = vrot.lane.b32.xlu0 %v2922_v29, %s2540_s30  ;;  %v1471_v29 = vld [vmem:[%s3169_s29 + $0x10] sm:$0xff] }
 0x6a2   : > { %2123 = vmatpush3.msra.mxu0 %v1471_v29 }
 0x6a3   : > { %2132 = vmatprep.subr.mxu0 %v2536_v1 }
 0x714   : > { %v1391_v37 = vpop.xlane.xlu0 %1390 }
 0x715   : > { %2266 = vrcp.f32 %v1391_v37 }
 0x718   : > { %v1549_v40 = vpop.permute.xlu0 %1548 }
 0x71c   : > { %v1547_v26 = vpop.permute.xlu0 %1546 }
 0x71f   : > { %v2267_v38 = vpop.eup %2266 }
 0x720   : > { %v1393_v39 = vsel %vm899_vm4, 0.0, %v2267_v38 }
 0x721   : > { %v1394_v41 = vmul.f32 %v2265_v34, %v1393_v39 }
 0x723   : > { %2120 = vmatmul.mubr.msk.f32.vlgmr.msra.gmra.mrb[10].mxu1 %vm816_vm2, %v1394_v41 }
 0x724   : > { %2128 = vmatpush3.xpose.msk.msra.mxu1 %vm816_vm2, %v1549_v40  ;;  %2129 = vmatprep.mubr.msk.f32.mxu1 %vm2535_vm0, %v2536_v1 }
 0x725   : > { %2137 = vmatprep.subr.mxu1 %v2536_v1 }
 0x727   : > { %2130 = vmatmul.mubr.msk.f32.vlgmr.msra.gmra.mrb[12].mxu1 %vm816_vm2, %v1547_v26 }
 0x728   : > { %2139 = vmatprep.mubr.msk.f32.mxu1 %vm2535_vm0, %v2536_v1 }
 0x7f6   : > { %v1467_v42 = vpop.f32.mrb[10].mxu1 }
 0x7f7   : > { %v2121_v44 = vpop.f32.mrb[11].mxu1  ;;  %2125 = vmatmul.mubr.msk.f32.vlgmr.msra.gmra.mrb[10].mxu0 %vm816_vm2, %v1467_v42 }
 0x7f8   : > { %2134 = vmatprep.mubr.msk.f32.mxu0 %vm2535_vm0, %v2536_v1  ;;  %v1714_v1 = vld [vmem:[%s3169_s29 + $0x18] sm:$0xff] }
 0x7f9   : > { %2138 = vmatpush3.msra.mxu1 %v1714_v1 }
 0x7fa   : > { %v1620_v45 = vpop.f32.mrb[12].mxu1 }
 0x7fb   : > { %v1624_v46 = vmul.f32 0.35355338, %v1620_v45  ;;  %v2131_v47 = vpop.f32.mrb[13].mxu1 }
 0x7fd   : > { %v1625_v48 = vsel %vm899_vm4, -3.4028235e+38, %v1624_v46 }
 0x7fe   : > { %v1626_v49 = vsel %vm816_vm2, %v1625_v48, -inf }
 0x7ff   : > { %1627 = vmax.xlane.f32.xlu0 %v1626_v49 }
 0x88c   : > { %v1628_v50 = vpop.xlane.xlu0 %1627 }
 0x88d   : > { %v1629_v51 = vsub.f32 %v1625_v48, %v1628_v50 }
 0x88f   : > { %v1630_v52 = vmul.f32 1.442695, %v1629_v51 }
 0x891   : > { %2268 = vpow2.f32 %v1630_v52 }
 0x89b   : > { %v2269_v53 = vpop.eup %2268 }
 0x89c   : > { %v1632_v54 = vsel %vm816_vm2, %v2269_v53, 0.0 }
 0x89d   : > { %1633 = vadd.xlane.f32.xlu1 %v1632_v54 }
 0x8ae   : > { %1638 = vrot.lane.b32.xlu1 %v2948_v36, %s2540_s30 }
 0x8ca   : > { %v1541_v55 = vpop.f32.mrb[10].mxu0 }
 0x8cb   : > { %v1545_v56 = vadd.f32 %v1541_v55, %v1300_v22  ;;  %v2126_v57 = vpop.f32.mrb[11].mxu0 }
 0x92a   : > { %v1634_v58 = vpop.xlane.xlu1 %1633 }
 0x92b   : > { %2270 = vrcp.f32 %v1634_v58 }
 0x92e   : > { %v1639_v59 = vpop.permute.xlu1 %1638 }
 0x92f   : > { %2133 = vmatpush3.msra.mxu0 %v1639_v59 }
 0x935   : > { %v2271_v60 = vpop.eup %2270 }
 0x936   : > { %v1636_v61 = vsel %vm899_vm4, 0.0, %v2271_v60 }
 0x937   : > { %v1637_v62 = vmul.f32 %v2269_v53, %v1636_v61 }
 0x939   : > { %2135 = vmatmul.mubr.msk.f32.vlgmr.msra.gmra.mrb[12].mxu0 %vm816_vm2, %v1637_v62 }
 0xa0c   : > { %v1710_v36 = vpop.f32.mrb[12].mxu0 }
 0xa0d   : > { %v2136_v63 = vpop.f32.mrb[13].mxu0  ;;  %2140 = vmatmul.mubr.msk.f32.vlgmr.msra.gmra.mrb[14].mxu1 %vm816_vm2, %v1710_v36 }
 0xae0   : > { %v1784_v0 = vpop.f32.mrb[14].mxu1 }
 0xae1   : > { %v1788_v3 = vadd.f32 %v1784_v0, %v1545_v56  ;;  %v2141_v43 = vpop.f32.mrb[15].mxu1 }
 0xae3   : > { %v1796_v4 = vadd.f32 %v2005_v2, %v1788_v3 }
 0xae5   : > { %1797 = vst.msk [vmem:[%s554_s28] sm:$0xff] %vm574_vm1, %v1796_v4 }
 0xae6   : > { %2459 = shalt.err (!%p2456_p2)
}
 0xae7   : > { %s2460_s26 = scalar_lea.hbm %s3045_s4, 128  ;;  %s2464_s21 = scalar_lea.hbm %s3172_s1, 256 }
 0xae8   : > { %p2461_p8 = scmp.ne.s32.totalorder %s3045_s4, %s2460_s26  ;;  %p2465_p1 = scmp.lt.u32.totalorder %s3045_s4, %s3172_s1 }
 0xae9   : > { %p2466_p6 = scmp.lt.u32.totalorder %s2464_s21, %s2460_s26  ;;  %p2468_p0 = scmp.lt.u32.totalorder %s2460_s26, %s3045_s4 }
 0xaea   : > { %p2462_p11 = pnand %p2461_p8, %p3173_p4 }
 0xaeb   : > { %p2467_p10 = por %p2466_p6, %p2465_p1 }
 0xaec   : > { %p2463_p12 = pneg %p2462_p11 }
 0xaed   : > { %p2469_p9 = por %p2468_p0, %p2467_p10 }
 0xaef   : > { %p2470_p13 = pnand %p2469_p9, %p2463_p12 }
 0xaf1   : > { %2473 = shalt.err (!%p2470_p13)
}
 0xaf2   : > { %2178 = dma.vmem_to_hbm [thread:$0]  (%p3173_p4), %s3047_s11, 128, %s3045_s4, %s1799_s14  }
 0xaf3 PF: > { %s3174_s20 = sld [smem:[#allocation19_spill]]  ;;  %s3175_s3 = sld [smem:[#allocation21_spill]] }
 0xaf4   : > { %s3176_s24 = sld [smem:[#allocation20_spill]] }
 0xaf9   : > { %s1824_s9 = sand.u32 1, %s3174_s20   ;;  %p3177_p7 = scmp.ne.s32.totalorder %s3175_s3, 0 }
 0xafa   : > { %p3178_p3 = scmp.ge.s32.totalorder %s3176_s24, 2  ;;  %s1825_s28 = scalar_lea.sflag [#allocation4], %s1824_s9 }
 0xafc   : > { %p2201_p5 = pnand %p3178_p3, %p3177_p7 }
 0xafe   : > { %2507 = dma.done.wait (!%p2201_p5), %s1825_s28, 128  }
 0xaff   : > { %2509 = vsyncadd (!%p2201_p5), %s1825_s28, 4294967168  ;;  %s3179_s24 = sld [smem:[#allocation22_spill]]  ;;  %s3180_s19 = sld [smem:[#allocation23_spill]] }
 0xb00   : > { %s3181_s21 = smov %s2516_s22  ;;  %s3182_s22 = smov %s2520_s23 }
 0xb05   : > { %p30_p2 = scmp.ge.s32.totalorder %s3179_s24, 4   ;;  %s3183_s23 = smov %s3180_s19 }
 0xb07   :  { %32 = sbr.rel (!%p30_p2) target bundleno = 17 (0x11), region = 152 }
 0xb0e   :  { %1830 = vsyncpa [#allocation3], 1 }
 0xb0f   :  { %1832 = vsyncpa [#allocation3 + $0x1], 1 }
 0xb10   :  { %1833 = vsyncpa [#allocation6], 1 }
 0xb11   :  { %1835 = vsyncpa [#allocation6 + $0x1], 1 }
 0xb12   :  { %1836 = vsyncpa [#allocation9], 1 }
 0xb13   :  { %1837 = vsyncpa [#allocation12], 1 }
 0xb14   :  { %1838 = vsyncpa [#allocation4], 1 }
 0xb15   :  { %1840 = vsyncpa [#allocation4 + $0x1], 1 }

</bundles_post_ra>
